<compile_context>
chip_gen: v7x
topology: tpu7x:2x2x1
jax: 0.10.0
libtpu: 0.0.40
codegen_flags: <defaults>
</compile_context>

<pallas_src>
import functools

import jax
import jax.numpy as jnp
from jax.experimental import pallas as pl
from jax.experimental.pallas import tpu as pltpu

_SUBLANE = 8


# ---------------------------------------------------------------------------
# Kernel
# ---------------------------------------------------------------------------
def _popularity_regression_kernel(x_ref, w_ref, b_ref, o_ref, *, compute_dtype):
    # x_ref: (TB, d_in)   f32 batch tile
    # w_ref: (d_in, d_out) VMEM-resident (already transposed in the wrapper)
    # b_ref: (1, d_out)    VMEM-resident, f32
    # o_ref: (TB, d_out)
    x = x_ref[...]
    if compute_dtype is not None:
        # Cast on the VPU under the DMA/MXU shadow (no extra HBM pass).
        x = x.astype(compute_dtype)
    acc = jnp.dot(x, w_ref[...], preferred_element_type=jnp.float32)  # MXU, f32 acc
    acc = acc + b_ref[...]                                            # bias broadcast
    o_ref[...] = jax.nn.sigmoid(acc).astype(o_ref.dtype)


# ---------------------------------------------------------------------------
# Tiling helpers
# ---------------------------------------------------------------------------
def _vmem_budget():
    """Generation-aware VMEM sizing (128 MiB on v5e/v6e, 64 MiB per TC on v7x)."""
    cap = 64 * 1024 * 1024  # conservative fallback == v7x per-TC VMEM
    try:
        cap = int(pltpu.get_tpu_info().vmem_capacity_bytes)
    except Exception:
        pass
    budget = (cap * 7) // 10      # tile-selection budget with headroom
    limit_cap = (cap * 8) // 10   # upper bound for vmem_limit_bytes
    return budget, limit_cap


def _pick_batch_tile(B, d_in, d_out, x_itemsize, out_itemsize, resident_bytes,
                     budget):
    """Largest batch tile (multiple of 8, <= 2048) whose double-buffered x/out
    tiles plus the resident weight/bias fit the VMEM budget."""
    per_row = 2 * d_in * x_itemsize + 2 * d_out * out_itemsize  # 2 pipeline bufs
    tb = min(B, 2048)
    tb = max(_SUBLANE, (tb // _SUBLANE) * _SUBLANE) if B >= _SUBLANE else B
    while tb > _SUBLANE and resident_bytes + tb * per_row > budget:
        tb = max(_SUBLANE, ((tb // 2) // _SUBLANE) * _SUBLANE)
    # v7x has 2 TensorCores: guarantee >= 2 grid steps on the "parallel" batch
    # axis whenever B is large enough to split, so both cores get work.
    if B >= 2 * _SUBLANE:
        half = ((pl.cdiv(B, 2) + _SUBLANE - 1) // _SUBLANE) * _SUBLANE
        tb = min(tb, half)
    need = resident_bytes + tb * per_row
    return tb, need


# ---------------------------------------------------------------------------
# Wrapper
# ---------------------------------------------------------------------------
def popularity_regression(x, weight, bias, *, compute_dtype=None):
    """sigmoid(x @ weight.T + bias), matching torch.nn.Linear + torch.nn.Sigmoid.

    x:      (B, input_dim)           float32
    weight: (output_dim, input_dim)  PyTorch nn.Linear layout
    bias:   (output_dim,)
    compute_dtype: optional MXU input dtype (e.g. jnp.bfloat16; valid on
                   v5e/v6e/v7x). x is cast inside the kernel; accumulation,
                   bias add and sigmoid stay float32.
    """
    B, d_in = x.shape
    d_out = weight.shape[0]
    out_dtype = x.dtype

    # One-time transpose to (d_in, d_out): canonical [M,K]x[K,N] MXU feed.
    w_t = weight.T
    if compute_dtype is not None:
        w_t = w_t.astype(compute_dtype)
    b2d = bias.reshape(1, d_out).astype(jnp.float32)

    x_itemsize = jnp.dtype(x.dtype).itemsize
    w_itemsize = jnp.dtype(w_t.dtype).itemsize
    out_itemsize = jnp.dtype(out_dtype).itemsize

    # Constant index maps => weight/bias are DMA'd once, but default pipelining
    # still allocates 2 buffers per input, so count them twice.
    # TODO(synk): add a K-tiled (d_in, "arbitrary" axis) variant with a VMEM f32
    # accumulator for the case where the resident weight alone exceeds VMEM.
    resident_bytes = 2 * (d_in * d_out * w_itemsize) + 2 * (d_out * 4)

    budget, limit_cap = _vmem_budget()
    tb, vmem_need = _pick_batch_tile(
        B, d_in, d_out, x_itemsize, out_itemsize, resident_bytes, budget)
    grid = (pl.cdiv(B, tb),)

    vmem_limit = int(min(max(2 * vmem_need, 32 * 1024 * 1024), limit_cap))
    vmem_limit = int(max(vmem_limit, vmem_need + (2 << 20)))  # never below need

    cost = pl.CostEstimate(
        flops=2 * B * d_in * d_out,
        transcendentals=B * d_out,                 # exp inside the sigmoid
        bytes_accessed=(x.size * x_itemsize
                        + w_t.size * w_itemsize
                        + b2d.size * 4
                        + B * d_out * out_itemsize),
    )

    kernel = functools.partial(_popularity_regression_kernel,
                               compute_dtype=compute_dtype)

    return pl.pallas_call(
        kernel,
        out_shape=jax.ShapeDtypeStruct((B, d_out), out_dtype),
        grid_spec=pl.GridSpec(
            grid=grid,
            in_specs=[
                pl.BlockSpec((tb, d_in), lambda i: (i, 0)),     # x batch tile
                pl.BlockSpec((d_in, d_out), lambda i: (0, 0)),  # weight (resident)
                pl.BlockSpec((1, d_out), lambda i: (0, 0)),     # bias   (resident)
            ],
            out_specs=pl.BlockSpec((tb, d_out), lambda i: (i, 0)),
        ),
        compiler_params=pltpu.CompilerParams(
            dimension_semantics=("parallel",),
            vmem_limit_bytes=vmem_limit,
        ),
        cost_estimate=cost,
    )(x, w_t, b2d)


# ---------------------------------------------------------------------------
# Self-test
# ---------------------------------------------------------------------------
if __name__ == "__main__":
    key = jax.random.PRNGKey(0)
    k_x, k_w, k_b = jax.random.split(key, 3)

    batch = 8
    input_dim = 32
    output_dim = 16

    # Deterministic synthetic parameters (mimic nn.Linear uniform init bounds).
    bound = 1.0 / jnp.sqrt(input_dim)
    x = jax.random.normal(k_x, (batch, input_dim), dtype=jnp.float32)
    weight = jax.random.uniform(
        k_w, (output_dim, input_dim), minval=-bound, maxval=bound, dtype=jnp.float32
    )
    bias = jax.random.uniform(
        k_b, (output_dim,), minval=-bound, maxval=bound, dtype=jnp.float32
    )

    # Pure-JAX reference.
    ref = jax.nn.sigmoid(x @ weight.T + bias)

    # f32 path.
    out = jax.block_until_ready(popularity_regression(x, weight, bias))
    assert out.shape == (batch, output_dim)
    assert jnp.allclose(out, ref, atol=1e-5, rtol=1e-5)

    # bf16 MXU-input path (in-kernel cast); f32 accumulation -> loose tolerance
    # only from the input cast.
    out_bf16 = jax.block_until_ready(
        popularity_regression(x, weight, bias, compute_dtype=jnp.bfloat16)
    )
    assert out_bf16.shape == (batch, output_dim)
    assert jnp.allclose(out_bf16, ref, atol=2e-2, rtol=2e-2)

    # Ragged last batch tile + multi-step (2-TC-shardable) grid path.
    batch2 = 20
    x2 = jax.random.normal(k_x, (batch2, input_dim), dtype=jnp.float32)
    ref2 = jax.nn.sigmoid(x2 @ weight.T + bias)
    out2 = jax.block_until_ready(popularity_regression(x2, weight, bias))
    assert out2.shape == (batch2, output_dim)
    assert jnp.allclose(out2, ref2, atol=1e-5, rtol=1e-5)

    print("KERNEL_OK")
</pallas_src>

<mosaic_0001>
module attributes {stable_mosaic.version = 11 : i64} {
  func.func @_popularity_regression_kernel(%arg0: i32, %arg1: memref<8x32xf32, #tpu.memory_space<vmem>>, %arg2: memref<32x16xf32, #tpu.memory_space<vmem>>, %arg3: memref<1x16xf32, #tpu.memory_space<vmem>>, %arg4: memref<8x16xf32, #tpu.memory_space<vmem>>) attributes {dimension_semantics = [#tpu.dimension_semantics<parallel>], iteration_bounds = array<i64: 1>, scalar_prefetch = 0 : i64, scratch_operands = 0 : i64, tpu.core_type = #tpu.core_type<tc>, window_params = [{transform_indices = @transform_0, window_bounds = array<i64: 8, 32>}, {pipeline_mode = #tpu.pipeline_mode<synchronous>, transform_indices = @transform_1, window_bounds = array<i64: 32, 16>}, {pipeline_mode = #tpu.pipeline_mode<synchronous>, transform_indices = @transform_2, window_bounds = array<i64: 1, 16>}, {transform_indices = @transform_3, window_bounds = array<i64: 8, 16>}]} {
    %c0 = arith.constant 0 : index
    %c0_0 = arith.constant 0 : index
    %0 = vector.load %arg1[%c0, %c0_0] : memref<8x32xf32, #tpu.memory_space<vmem>>, vector<8x32xf32>
    %c0_1 = arith.constant 0 : index
    %c0_2 = arith.constant 0 : index
    %1 = vector.load %arg2[%c0_1, %c0_2] : memref<32x16xf32, #tpu.memory_space<vmem>>, vector<32x16xf32>
    %cst = arith.constant dense<0.000000e+00> : vector<8x16xf32>
    %2 = tpu.matmul %0, %1, %cst {dimension_numbers = #tpu.dot_dimension_numbers<[1], [0], [0], [1], [0, 0, 1, 1], [], []>} : vector<8x32xf32>, vector<32x16xf32>, vector<8x16xf32> -> vector<8x16xf32>
    %c0_3 = arith.constant 0 : index
    %c0_4 = arith.constant 0 : index
    %3 = vector.load %arg3[%c0_3, %c0_4] : memref<1x16xf32, #tpu.memory_space<vmem>>, vector<1x16xf32>
    %4 = vector.broadcast %3 : vector<1x16xf32> to vector<8x16xf32>
    %5 = arith.addf %2, %4 : vector<8x16xf32>
    %6 = arith.negf %5 : vector<8x16xf32>
    %7 = math.exp %6 : vector<8x16xf32>
    %cst_5 = arith.constant 1.000000e+00 : f32
    %8 = vector.broadcast %cst_5 : f32 to vector<8x16xf32>
    %9 = arith.addf %8, %7 : vector<8x16xf32>
    %10 = arith.divf %8, %9 : vector<8x16xf32>
    %c0_6 = arith.constant 0 : index
    %c0_7 = arith.constant 0 : index
    %11 = vector.load %arg4[%c0_6, %c0_7] : memref<8x16xf32, #tpu.memory_space<vmem>>, vector<8x16xf32>
    tpu.vector_store %arg4[%c0_6, %c0_7], %10 {strides = array<i32>} : memref<8x16xf32, #tpu.memory_space<vmem>>, vector<8x16xf32>,
    return
  }
  func.func @transform_0(%arg0: i32) -> (i32, i32) {
    %c0_i32 = arith.constant 0 : i32
    %c0_i32_0 = arith.constant 0 : i32
    return %arg0, %c0_i32 : i32, i32
  }
  func.func @transform_1(%arg0: i32) -> (i32, i32) {
    %c0_i32 = arith.constant 0 : i32
    %c0_i32_0 = arith.constant 0 : i32
    %c0_i32_1 = arith.constant 0 : i32
    return %c0_i32, %c0_i32_0 : i32, i32
  }
  func.func @transform_2(%arg0: i32) -> (i32, i32) {
    %c0_i32 = arith.constant 0 : i32
    %c0_i32_0 = arith.constant 0 : i32
    %c0_i32_1 = arith.constant 0 : i32
    return %c0_i32, %c0_i32_0 : i32, i32
  }
  func.func @transform_3(%arg0: i32) -> (i32, i32) {
    %c0_i32 = arith.constant 0 : i32
    %c0_i32_0 = arith.constant 0 : i32
    return %arg0, %c0_i32 : i32, i32
  }
}

</mosaic_0001>

<bundles_post_ra>
// kernel: tpu_custom_call.1
= control target key start
LH: loop header
LB: loop body
LE: loop exit
PB: predicated region body
PF: predicated region fallthrough
CT: control target
= control target key end

     0   :  { %v180_v3 = vmov 0.0|0.0   ;;  %vm181_vm0 = vmmov 0   ;;  %v182_v6 = vmov 0.0   ;;  %s234_s0 = inlined_call_operand.vmem [shape: f32[8,32], index: 0, kind: input, shape index: {}]   ;;  %s235_s1 = inlined_call_operand.vmem [shape: f32[32,16], index: 1, kind: input, shape index: {}]   ;;  %s236_s2 = inlined_call_operand.vmem [shape: f32[1,16], index: 2, kind: input, shape index: {}]   ;;  %s237_s3 = inlined_call_operand.hbm [shape: f32[8,16], index: 3, kind: output, shape index: {}]  }
   0x1   :  { %v16_v0 = vld [vmem:[%s235_s1] sm:$0xff]  ;;  %v17_v1 = vld [vmem:[%s235_s1 + $0x8] sm:$0xff]  ;;  %v18_v2 = vld [vmem:[%s235_s1 + $0x10] sm:$0xff]  ;;  %142 = vmatprep.subr.bf16.mxu0 %v180_v3  ;;  %139 = vmatprep.mubr.msk.f32.mxu0 %vm181_vm0, %v182_v6 }
   0x2   :  { %v143_v4 = vpack.c.bf16 %v17_v1, %v16_v0  ;;  %v19_v5 = vld [vmem:[%s235_s1 + $0x18] sm:$0xff] }
   0x3   :  { %8 = vsyncpa [#allocation3], 0  ;;  %v146_v7 = vpack.c.bf16 %v19_v5, %v18_v2  ;;  %v15_v8 = vld [vmem:[%s234_s0] sm:$0xff]  ;;  %vm27_vm1 = vcmask 261120   ;;  %s183_s1 = smov [#allocation2]   ;;  %vm107_vm2 = vcmask 130048  }
   0x4   :  { %144 = vmatpush3.bf16.msra.mxu0 %v143_v4  ;;  %v123_v9 = vld [vmem:[%s236_s2] ss:$0 sm:$0xff]  ;;  %s115_s24 = sshll.u32 %s183_s1, 4  ;;  %s116_s24 = int_to_ptr.vmem [resolvable:$true] %s115_s24 }
   0x5   :  { %145 = vmatprep.subr.bf16.mxu0 %v180_v3  ;;  %s156_s0 = scalar_lea.vmem %s116_s24, 128  ;;  %p161_p1 = scmp.lt.s32.totalorder %s116_s24, %s116_s24 }
   0x6   :  { %p157_p0 = scmp.ne.s32.totalorder %s116_s24, %s156_s0  ;;  %p162_p2 = scmp.lt.s32.totalorder %s156_s0, %s156_s0 }
   0x8   :  { %147 = vmatpush3.bf16.msra.mxu0 %v146_v7  ;;  %p163_p3 = por %p162_p2, %p161_p1 }
   0xa   :  { %p164_p4 = pnand %p163_p3, %p157_p0 }
   0xb   :  { %140 = vmatmul.mubr.msk.f32.vlgmr.msra.gmra.mrb[0].mxu0 %vm27_vm1, %v15_v8 }
  0xde   :  { %v97_v10 = vpop.f32.mrb[0].mxu0 }
  0xdf   :  { %v98_v11 = vadd.f32 %v123_v9, %v97_v10  ;;  %v141_v12 = vpop.f32.mrb[1].mxu0 }
  0xe1   :  { %v125_v13 = vmul.f32 -1.442695, %v98_v11 }
  0xe3   :  { %152 = vpow2.f32 %v125_v13 }
  0xed   :  { %v153_v14 = vpop.eup %152 }
  0xee   :  { %v104_v15 = vadd.f32 1.0, %v153_v14 }
  0xf0   :  { %154 = vrcp.f32 %v104_v15 }
  0xfa   :  { %v155_v16 = vpop.eup %154 }
  0xfb   :  { %108 = vst.msk [vmem:[#allocation2] sm:$0xff] %vm107_vm2, %v155_v16 }
  0xfc   :  { %167 = shalt.err (!%p164_p4)
}
  0xfd   :  { %s168_s26 = scalar_lea.hbm %s237_s3, 128 }
  0xfe   :  { %p169_p5 = scmp.ne.s32.totalorder %s237_s3, %s168_s26  ;;  %p172_p6 = scmp.lt.u32.totalorder %s168_s26, %s237_s3 }
 0x100   :  { %p174_p7 = pnand %p172_p6, %p169_p5 }
 0x102   :  { %177 = shalt.err (!%p174_p7)
}
 0x103   :  { %118 = dma.vmem_to_hbm [thread:$0]  %s116_s24, 128, %s237_s3, [#allocation3]  }
 0x104   :  { %178 = dma.done.wait [#allocation3], 128  }
 0x105   :  { %179 = vsyncadd [#allocation3], 4294967168 }
 0x106   :  { %122 = vsyncpa [#allocation3], 1 }

</bundles_post_ra>
